<compile_context>
chip_gen: v5e
topology: v5e:2x2
jax: 0.10.0
libtpu: 0.0.40
codegen_flags: <defaults>
</compile_context>

<pallas_src>
import functools

import jax
import jax.numpy as jnp
from jax import lax
from jax.experimental import pallas as pl
from jax.experimental.pallas import tpu as pltpu


_VMEM_LIMIT_BYTES = 48 * 1024 * 1024   # < v7x 64 MiB physical, > 16/32 MiB scoped defaults
_VMEM_TILE_BUDGET = 24 * 1024 * 1024   # target estimated usage (2x headroom vs the limit)


def _round_up(x, m):
    return ((x + m - 1) // m) * m


def _vmem_estimate_bytes(tb, s, dp, fp, out_itemsize):
    """Rough per-grid-step VMEM estimate: pipelined blocks + weights + temporaries."""
    m = tb * s
    io_blocks = 2 * (m * dp * 2) + 2 * (m * dp * out_itemsize) + 2 * tb * 4
    weights = 2 * 2 * (3 * dp * dp + dp * dp + dp * fp + fp * dp) + 4 * (9 * dp + fp)
    temps = (m * 3 * dp * 4                              # fused qkv f32 accumulator
             + 3 * m * dp * 2                            # q / k / v bf16 casts
             + 2 * tb * s * s * 4 + tb * s * s * 2       # scores + p (f32) + p (bf16)
             + 4 * m * dp * 4                            # attn / h / ffn-out / y (f32)
             + m * fp * 4 + m * fp * 2)                  # FFN activation f32 + bf16
    return io_blocks + weights + temps


def _choose_tile_b(batch, seq_len, dp, fp, out_itemsize,
                   target_rows=512, vmem_budget=_VMEM_TILE_BUDGET):
    """Sequences per grid step: >= ~target_rows MXU rows, fits the VMEM budget, and
    (when possible) >= 2 grid steps so the 'parallel' axis shards across v7x's 2 TCs."""
    def fits(tb):
        return _vmem_estimate_bytes(tb, seq_len, dp, fp, out_itemsize) <= vmem_budget

    tb = max(1, -(-target_rows // seq_len))
    if tb >= batch and fits(batch):
        return batch                                   # whole batch, full-extent block
    tb = max(8, (min(tb, _round_up(batch, 8)) // 8) * 8)  # sublane-aligned tile
    while tb > 8 and not fits(tb):
        tb -= 8
    while tb > 8 and -(-_round_up(batch, tb) // tb) < 2:
        tb -= 8                                        # keep >= 2 grid steps (megacore)
    return tb


# ----------------------------------------------------------------------------
# Pallas kernel: one grid step processes TB sequences.
# ----------------------------------------------------------------------------
def _encoder_block_kernel(lens_ref,   # VMEM (TB, 1) int32     per-sequence valid lengths
                          x_ref,      # VMEM (TB, S, Dp) bf16  token-seq embeddings (zero-padded)
                          wqkv_ref,   # VMEM (Dp, 3*Dp) bf16   fused Wq|Wk|Wv
                          wo_ref,     # VMEM (Dp, Dp) bf16
                          w1_ref,     # VMEM (Dp, Fp) bf16
                          w2_ref,     # VMEM (Fp, Dp) bf16
                          vecs_ref,   # VMEM (9, Dp) f32: bq, bk, bv, bo, b2, g1, be1, g2, be2
                          b1_ref,     # VMEM (1, Fp) f32
                          o_ref,      # VMEM (TB, S, Dp) f32/bf16
                          *, true_d):
    TB, S, Dp = x_ref.shape
    M = TB * S
    x_bf = x_ref[...].reshape(M, Dp)                 # bf16 (M, Dp) slab for the MXU

    vecs = vecs_ref[...]                             # (9, Dp) f32
    bq, bk, bv, bo = vecs[0:1], vecs[1:2], vecs[2:3], vecs[3:4]
    b2, g1, be1, g2, be2 = vecs[4:5], vecs[5:6], vecs[6:7], vecs[7:8], vecs[8:9]
    b1 = b1_ref[...]                                 # (1, Fp) f32

    scale = 1.0 / (float(true_d) ** 0.5)
    inv_d = 1.0 / float(true_d)
    col_valid = None
    if true_d != Dp:
        col_valid = lax.broadcasted_iota(jnp.int32, (1, Dp), 1) < true_d

    # --- fused QKV projection: single bf16 matmul, f32 accumulation ---
    qkv = jnp.dot(x_bf, wqkv_ref[...], preferred_element_type=jnp.float32)   # (M, 3*Dp)
    # fold the 1/sqrt(D) scale into q before the bf16 cast (saves a (TB,S,S) multiply)
    q3 = ((qkv[:, :Dp] + bq) * scale).astype(jnp.bfloat16).reshape(TB, S, Dp)
    k3 = (qkv[:, Dp:2 * Dp] + bk).astype(jnp.bfloat16).reshape(TB, S, Dp)
    v3 = (qkv[:, 2 * Dp:] + bv).astype(jnp.bfloat16).reshape(TB, S, Dp)

    # --- attention scores (bf16 MXU, f32 accumulate) + additive length mask ---
    # NOTE(v5e): if the MLIR dump shows a per-batch vxpose of k feeding this einsum,
    # stage k transposed instead.
    scores = jnp.einsum("bqd,bkd->bqk", q3, k3,
                        preferred_element_type=jnp.float32)                  # (TB, S, S)
    lens = lens_ref[...]                                                     # (TB, 1)
    key_bias = jnp.where(
        lax.broadcasted_iota(jnp.int32, (TB, 1, S), 2) < lens[:, :, None],
        0.0, -1e30)                                                          # (TB, 1, S)
    scores = scores + key_bias

    # softmax kept entirely in f32 (mask bias / max-subtract / exp / sum)
    scores = scores - scores.max(axis=-1, keepdims=True)
    p = jnp.exp(scores)
    p = p * pl.reciprocal(p.sum(axis=-1, keepdims=True), approx=True)

    attn3 = jnp.einsum("bqk,bkd->bqd", p.astype(jnp.bfloat16), v3,
                       preferred_element_type=jnp.float32)                   # (TB, S, Dp)
    attn = jnp.dot(attn3.reshape(M, Dp).astype(jnp.bfloat16), wo_ref[...],
                   preferred_element_type=jnp.float32) + bo                  # (M, Dp) f32

    def layer_norm(t, gamma, beta):
        mu = jnp.sum(t, axis=-1, keepdims=True) * inv_d
        cent = t - mu
        if col_valid is not None:          # statistics over the true D columns only
            cent = jnp.where(col_valid, cent, 0.0)
        var = jnp.sum(cent * cent, axis=-1, keepdims=True) * inv_d
        return cent * lax.rsqrt(var + 1e-5) * gamma + beta

    # --- residual + layernorm 1 (f32) ---
    h = layer_norm(x_bf.astype(jnp.float32) + attn, g1, be1)

    # --- feed-forward (relu, activation_fn='relu'), bf16 MXU / f32 accumulate ---
    f = jnp.dot(h.astype(jnp.bfloat16), w1_ref[...],
                preferred_element_type=jnp.float32) + b1
    f = jnp.maximum(f, 0.0)
    f = jnp.dot(f.astype(jnp.bfloat16), w2_ref[...],
                preferred_element_type=jnp.float32) + b2
    # TODO(synk): row-chunk this FFN with lax.fori_loop(unroll=True) for production
    #             shapes where (TB*S, Fp) f32 would dominate VMEM (v7x).

    # --- residual + layernorm 2 (f32) ---
    y = layer_norm(h + f, g2, be2)

    # zero out padded positions (pack_padded_sequence semantics); dropout = identity (eval)
    y3 = y.reshape(TB, S, Dp)
    row_valid = lax.broadcasted_iota(jnp.int32, (TB, S, 1), 1) < lens[:, :, None]
    o_ref[...] = jnp.where(row_valid, y3, 0.0).astype(o_ref.dtype)


# ----------------------------------------------------------------------------
# Wrapper: CodeExpressionEncoder forward (FlatTokensSeq branch)
# ----------------------------------------------------------------------------
def code_expression_encoder_forward(token_seqs_embeddings, seq_lengths, params):
    """token_seqs_embeddings: [B, S, D] float32; seq_lengths: [B] int.

    Returns encoded token_seqs [B, S, D] (== CodeExpressionEncodingsTensors.token_seqs).
    """
    B, S, D = token_seqs_embeddings.shape
    F = params["w1"].shape[1]
    Dp = _round_up(D, 128)          # lane-dense feature dim
    Fp = _round_up(F, 128)
    Sp = _round_up(S, 8)            # sublane-aligned -> in-kernel reshapes are no-ops

    # bf16 output when we slice/cast anyway (D < 128) -> halves output HBM bytes
    out_dtype = jnp.float32 if D == Dp else jnp.bfloat16
    out_itemsize = jnp.dtype(out_dtype).itemsize

    TB = _choose_tile_b(B, Sp, Dp, Fp, out_itemsize)
    B_pad = _round_up(B, TB)
    num_blocks = B_pad // TB

    # --- activations: cast to bf16; only materialize a padded copy if needed ---
    x_in = token_seqs_embeddings.astype(jnp.bfloat16)
    if (B_pad, Sp, Dp) == (B, S, D):
        x = x_in
    else:
        x = jnp.zeros((B_pad, Sp, Dp), jnp.bfloat16).at[:B, :S, :D].set(x_in)

    lens = jnp.zeros((B_pad, 1), jnp.int32).at[:B, 0].set(seq_lengths.astype(jnp.int32))

    # --- pack + zero-pad weights (zero padding keeps padded lanes exactly zero) ---
    def padw(w, r, c, dtype):
        w = w.astype(dtype)
        if w.shape == (r, c):
            return w
        return jnp.zeros((r, c), dtype).at[:w.shape[0], :w.shape[1]].set(w)

    # fused QKV weight (Dp, 3*Dp): one full-width MXU matmul instead of three
    wqkv = jnp.concatenate(
        [padw(params[k], Dp, Dp, jnp.bfloat16) for k in ("wq", "wk", "wv")], axis=1)
    wo = padw(params["wo"], Dp, Dp, jnp.bfloat16)
    w1p = padw(params["w1"], Dp, Fp, jnp.bfloat16)
    w2p = padw(params["w2"], Fp, Dp, jnp.bfloat16)
    vec_names = ("bq", "bk", "bv", "bo", "b2", "g1", "be1", "g2", "be2")
    vecs = jnp.stack([padw(params[k].reshape(1, -1), 1, Dp, jnp.float32)[0]
                      for k in vec_names])                                  # (9, Dp) f32
    b1p = padw(params["b1"].reshape(1, -1), 1, Fp, jnp.float32)             # (1, Fp) f32

    grid_spec = pltpu.PrefetchScalarGridSpec(
        num_scalar_prefetch=0,
        grid=(num_blocks,),
        in_specs=[
            pl.BlockSpec((TB, 1), lambda g: (g, 0)),            # lens
            pl.BlockSpec((TB, Sp, Dp), lambda g: (g, 0, 0)),    # x (bf16)
            pl.BlockSpec((Dp, 3 * Dp), lambda g: (0, 0)),       # fused Wq|Wk|Wv
            pl.BlockSpec((Dp, Dp), lambda g: (0, 0)),           # Wo
            pl.BlockSpec((Dp, Fp), lambda g: (0, 0)),           # W1
            pl.BlockSpec((Fp, Dp), lambda g: (0, 0)),           # W2
            pl.BlockSpec((9, Dp), lambda g: (0, 0)),            # packed D-sized vectors
            pl.BlockSpec((1, Fp), lambda g: (0, 0)),            # b1
        ],
        out_specs=pl.BlockSpec((TB, Sp, Dp), lambda g: (g, 0, 0)),
    )

    flops = (2 * B_pad * Sp * Dp * (3 * Dp + Dp + 2 * Fp)
             + 4 * B_pad * Sp * Sp * Dp)
    transcendentals = B_pad * Sp * Sp + 3 * B_pad * Sp
    bytes_accessed = (x.size * 2 + B_pad * Sp * Dp * out_itemsize
                      + (wqkv.size + wo.size + w1p.size + w2p.size) * 2
                      + (vecs.size + b1p.size + lens.size) * 4)

    out = pl.pallas_call(
        functools.partial(_encoder_block_kernel, true_d=D),
        out_shape=jax.ShapeDtypeStruct((B_pad, Sp, Dp), out_dtype),
        grid_spec=grid_spec,
        compiler_params=pltpu.CompilerParams(
            dimension_semantics=("parallel",),
            vmem_limit_bytes=_VMEM_LIMIT_BYTES),
        cost_estimate=pl.CostEstimate(flops=int(flops),
                                      transcendentals=int(transcendentals),
                                      bytes_accessed=int(bytes_accessed)),
    )(lens, x, wqkv, wo, w1p, w2p, vecs, b1p)

    if (B_pad, Sp, Dp) != (B, S, D):
        out = out[:B, :S, :D]
    return out.astype(token_seqs_embeddings.dtype)


# ----------------------------------------------------------------------------
# Pure-JAX reference (same math, f32) for a correctness sanity check.
# ----------------------------------------------------------------------------
def _reference_forward(x, lengths, params):
    B, S, D = x.shape
    scale = 1.0 / (float(D) ** 0.5)
    q = x @ params["wq"] + params["bq"]
    k = x @ params["wk"] + params["bk"]
    v = x @ params["wv"] + params["bv"]
    scores = jnp.einsum("bqd,bkd->bqk", q, k) * scale
    key_idx = jnp.arange(S)[None, None, :]
    scores = jnp.where(key_idx < lengths[:, None, None], scores, -1e30)
    p = jax.nn.softmax(scores, axis=-1)
    attn = jnp.einsum("bqk,bkd->bqd", p, v) @ params["wo"] + params["bo"]
    h = x + attn
    mu = h.mean(-1, keepdims=True)
    var = ((h - mu) ** 2).mean(-1, keepdims=True)
    h = (h - mu) * lax.rsqrt(var + 1e-5) * params["g1"] + params["be1"]
    f = jnp.maximum(h @ params["w1"] + params["b1"], 0.0) @ params["w2"] + params["b2"]
    y = h + f
    mu2 = y.mean(-1, keepdims=True)
    var2 = ((y - mu2) ** 2).mean(-1, keepdims=True)
    y = (y - mu2) * lax.rsqrt(var2 + 1e-5) * params["g2"] + params["be2"]
    row_idx = jnp.arange(S)[None, :, None]
    return jnp.where(row_idx < lengths[:, None, None], y, 0.0)


def _init_params(key, D, F):
    keys = jax.random.split(key, 8)
    s = 0.05
    return {
        "wq": s * jax.random.normal(keys[0], (D, D), jnp.float32),
        "wk": s * jax.random.normal(keys[1], (D, D), jnp.float32),
        "wv": s * jax.random.normal(keys[2], (D, D), jnp.float32),
        "wo": s * jax.random.normal(keys[3], (D, D), jnp.float32),
        "w1": s * jax.random.normal(keys[4], (D, F), jnp.float32),
        "w2": s * jax.random.normal(keys[5], (F, D), jnp.float32),
        "bq": jnp.zeros((1, D), jnp.float32),
        "bk": jnp.zeros((1, D), jnp.float32),
        "bv": jnp.zeros((1, D), jnp.float32),
        "bo": jnp.zeros((1, D), jnp.float32),
        "b1": jnp.zeros((1, F), jnp.float32),
        "b2": jnp.zeros((1, D), jnp.float32),
        "g1": jnp.ones((1, D), jnp.float32),
        "be1": jnp.zeros((1, D), jnp.float32),
        "g2": jnp.ones((1, D), jnp.float32),
        "be2": jnp.zeros((1, D), jnp.float32),
    }


if __name__ == "__main__":
    B, S, D, F = 2, 8, 32, 64   # batch of token sequences, token_encoding_dim=32

    key = jax.random.PRNGKey(0)
    k_x, k_p = jax.random.split(key)
    token_seqs_embeddings = jax.random.normal(k_x, (B, S, D), jnp.float32)
    seq_lengths = jnp.array([8, 5], dtype=jnp.int32)   # per-sequence valid lengths
    params = _init_params(k_p, D, F)

    out = code_expression_encoder_forward(token_seqs_embeddings, seq_lengths, params)
    out = jax.block_until_ready(out)

    ref = _reference_forward(token_seqs_embeddings, seq_lengths, params)
    assert out.shape == (B, S, D)
    # tolerance covers bf16 MXU operands (f32 accumulation) + approximate EUP reciprocal
    assert jnp.allclose(out, ref, atol=5e-2, rtol=5e-2), "mismatch vs reference"

    print("KERNEL_OK")
</pallas_src>

<mosaic_0001>
module attributes {stable_mosaic.version = 11 : i64} {
  func.func @_encoder_block_kernel(%arg0: i32, %arg1: memref<2x1xi32, #tpu.memory_space<vmem>>, %arg2: memref<2x8x128xbf16, #tpu.memory_space<vmem>>, %arg3: memref<128x384xbf16, #tpu.memory_space<vmem>>, %arg4: memref<128x128xbf16, #tpu.memory_space<vmem>>, %arg5: memref<128x128xbf16, #tpu.memory_space<vmem>>, %arg6: memref<128x128xbf16, #tpu.memory_space<vmem>>, %arg7: memref<9x128xf32, #tpu.memory_space<vmem>>, %arg8: memref<1x128xf32, #tpu.memory_space<vmem>>, %arg9: memref<2x8x128xbf16, #tpu.memory_space<vmem>>) attributes {dimension_semantics = [#tpu.dimension_semantics<parallel>], iteration_bounds = array<i64: 1>, scalar_prefetch = 0 : i64, scratch_operands = 0 : i64, tpu.core_type = #tpu.core_type<tc>, window_params = [{transform_indices = @transform_0, window_bounds = array<i64: 2, 1>}, {transform_indices = @transform_1, window_bounds = array<i64: 2, 8, 128>}, {pipeline_mode = #tpu.pipeline_mode<synchronous>, transform_indices = @transform_2, window_bounds = array<i64: 128, 384>}, {pipeline_mode = #tpu.pipeline_mode<synchronous>, transform_indices = @transform_3, window_bounds = array<i64: 128, 128>}, {pipeline_mode = #tpu.pipeline_mode<synchronous>, transform_indices = @transform_4, window_bounds = array<i64: 128, 128>}, {pipeline_mode = #tpu.pipeline_mode<synchronous>, transform_indices = @transform_5, window_bounds = array<i64: 128, 128>}, {pipeline_mode = #tpu.pipeline_mode<synchronous>, transform_indices = @transform_6, window_bounds = array<i64: 9, 128>}, {pipeline_mode = #tpu.pipeline_mode<synchronous>, transform_indices = @transform_7, window_bounds = array<i64: 1, 128>}, {transform_indices = @transform_8, window_bounds = array<i64: 2, 8, 128>}]} {
    %c0 = arith.constant 0 : index
    %c0_0 = arith.constant 0 : index
    %c0_1 = arith.constant 0 : index
    %0 = vector.load %arg2[%c0, %c0_0, %c0_1] : memref<2x8x128xbf16, #tpu.memory_space<vmem>>, vector<2x8x128xbf16>
    %1 = vector.shape_cast %0 : vector<2x8x128xbf16> to vector<16x128xbf16>
    %c0_2 = arith.constant 0 : index
    %c0_3 = arith.constant 0 : index
    %2 = vector.load %arg7[%c0_2, %c0_3] : memref<9x128xf32, #tpu.memory_space<vmem>>, vector<9x128xf32>
    %3 = vector.extract_strided_slice %2 {offsets = [0, 0], sizes = [1, 128], strides = [1, 1]} : vector<9x128xf32> to vector<1x128xf32>
    %4 = vector.extract_strided_slice %2 {offsets = [1, 0], sizes = [1, 128], strides = [1, 1]} : vector<9x128xf32> to vector<1x128xf32>
    %5 = vector.extract_strided_slice %2 {offsets = [2, 0], sizes = [1, 128], strides = [1, 1]} : vector<9x128xf32> to vector<1x128xf32>
    %6 = vector.extract_strided_slice %2 {offsets = [3, 0], sizes = [1, 128], strides = [1, 1]} : vector<9x128xf32> to vector<1x128xf32>
    %7 = vector.extract_strided_slice %2 {offsets = [4, 0], sizes = [1, 128], strides = [1, 1]} : vector<9x128xf32> to vector<1x128xf32>
    %8 = vector.extract_strided_slice %2 {offsets = [5, 0], sizes = [1, 128], strides = [1, 1]} : vector<9x128xf32> to vector<1x128xf32>
    %9 = vector.extract_strided_slice %2 {offsets = [6, 0], sizes = [1, 128], strides = [1, 1]} : vector<9x128xf32> to vector<1x128xf32>
    %10 = vector.extract_strided_slice %2 {offsets = [7, 0], sizes = [1, 128], strides = [1, 1]} : vector<9x128xf32> to vector<1x128xf32>
    %11 = vector.extract_strided_slice %2 {offsets = [8, 0], sizes = [1, 128], strides = [1, 1]} : vector<9x128xf32> to vector<1x128xf32>
    %c0_4 = arith.constant 0 : index
    %c0_5 = arith.constant 0 : index
    %12 = vector.load %arg8[%c0_4, %c0_5] : memref<1x128xf32, #tpu.memory_space<vmem>>, vector<1x128xf32>
    %13 = tpu.iota {dimensions = array<i32: 1>} : vector<1x128xi32>
    %c32_i32 = arith.constant 32 : i32
    %14 = vector.broadcast %c32_i32 : i32 to vector<1x128xi32>
    %15 = arith.cmpi slt, %13, %14 : vector<1x128xi32>
    %c0_6 = arith.constant 0 : index
    %c0_7 = arith.constant 0 : index
    %16 = vector.load %arg3[%c0_6, %c0_7] : memref<128x384xbf16, #tpu.memory_space<vmem>>, vector<128x384xbf16>
    %cst = arith.constant dense<0.000000e+00> : vector<16x384xf32>
    %17 = tpu.matmul %1, %16, %cst {dimension_numbers = #tpu.dot_dimension_numbers<[1], [0], [0], [1], [0, 0, 1, 1], [], []>} : vector<16x128xbf16>, vector<128x384xbf16>, vector<16x384xf32> -> vector<16x384xf32>
    %18 = vector.extract_strided_slice %17 {offsets = [0, 0], sizes = [16, 128], strides = [1, 1]} : vector<16x384xf32> to vector<16x128xf32>
    %19 = vector.broadcast %3 : vector<1x128xf32> to vector<16x128xf32>
    %20 = arith.addf %18, %19 : vector<16x128xf32>
    %cst_8 = arith.constant 0.176776692 : f32
    %21 = vector.broadcast %cst_8 : f32 to vector<16x128xf32>
    %22 = arith.mulf %20, %21 : vector<16x128xf32>
    %23 = arith.truncf %22 : vector<16x128xf32> to vector<16x128xbf16>
    %24 = vector.shape_cast %23 : vector<16x128xbf16> to vector<2x8x128xbf16>
    %25 = vector.extract_strided_slice %17 {offsets = [0, 128], sizes = [16, 128], strides = [1, 1]} : vector<16x384xf32> to vector<16x128xf32>
    %26 = vector.broadcast %4 : vector<1x128xf32> to vector<16x128xf32>
    %27 = arith.addf %25, %26 : vector<16x128xf32>
    %28 = arith.truncf %27 : vector<16x128xf32> to vector<16x128xbf16>
    %29 = vector.shape_cast %28 : vector<16x128xbf16> to vector<2x8x128xbf16>
    %30 = vector.extract_strided_slice %17 {offsets = [0, 256], sizes = [16, 128], strides = [1, 1]} : vector<16x384xf32> to vector<16x128xf32>
    %31 = vector.broadcast %5 : vector<1x128xf32> to vector<16x128xf32>
    %32 = arith.addf %30, %31 : vector<16x128xf32>
    %33 = arith.truncf %32 : vector<16x128xf32> to vector<16x128xbf16>
    %34 = vector.shape_cast %33 : vector<16x128xbf16> to vector<2x8x128xbf16>
    "tpu.trace_start"() <{level = 10 : i32, message = "bqd,bkd->bqk"}> : () -> ()
    %cst_9 = arith.constant dense<0.000000e+00> : vector<2x8x8xf32>
    %35 = tpu.matmul %24, %29, %cst_9 {dimension_numbers = #tpu.dot_dimension_numbers<[2], [2], [1], [1], [0, 0, 0, 1, 1, 1], [0], [0]>} : vector<2x8x128xbf16>, vector<2x8x128xbf16>, vector<2x8x8xf32> -> vector<2x8x8xf32>
    "tpu.trace_stop"() : () -> ()
    %c0_10 = arith.constant 0 : index
    %c0_11 = arith.constant 0 : index
    %36 = vector.load %arg1[%c0_10, %c0_11] : memref<2x1xi32, #tpu.memory_space<vmem>>, vector<2x1xi32>
    %37 = tpu.iota {dimensions = array<i32: 2>} : vector<2x1x8xi32>
    %38 = vector.shape_cast %36 : vector<2x1xi32> to vector<2x1x1xi32>
    %39 = vector.broadcast %38 : vector<2x1x1xi32> to vector<2x1x8xi32>
    %40 = arith.cmpi slt, %37, %39 : vector<2x1x8xi32>
    %cst_12 = arith.constant 0.000000e+00 : f32
    %cst_13 = arith.constant -1.000000e+30 : f32
    %41 = vector.broadcast %cst_12 : f32 to vector<2x1x8xf32>
    %42 = vector.broadcast %cst_13 : f32 to vector<2x1x8xf32>
    %43 = arith.select %40, %41, %42 : vector<2x1x8xi1>, vector<2x1x8xf32>
    %44 = vector.broadcast %43 : vector<2x1x8xf32> to vector<2x8x8xf32>
    %45 = arith.addf %35, %44 : vector<2x8x8xf32>
    %cst_14 = arith.constant dense<0xFF800000> : vector<2x8xf32>
    %46 = vector.multi_reduction <maximumf>, %45, %cst_14 [2] : vector<2x8x8xf32> to vector<2x8xf32>
    %47 = vector.shape_cast %46 : vector<2x8xf32> to vector<2x8x1xf32>
    %48 = vector.broadcast %47 : vector<2x8x1xf32> to vector<2x8x8xf32>
    %49 = arith.subf %45, %48 : vector<2x8x8xf32>
    %50 = math.exp %49 : vector<2x8x8xf32>
    %cst_15 = arith.constant dense<0.000000e+00> : vector<2x8xf32>
    %51 = vector.multi_reduction <add>, %50, %cst_15 [2] : vector<2x8x8xf32> to vector<2x8xf32>
    %52 = vector.shape_cast %51 : vector<2x8xf32> to vector<2x8x1xf32>
    %53 = tpu.reciprocal %52 {approx = true} : vector<2x8x1xf32> -> vector<2x8x1xf32>
    %54 = vector.broadcast %53 : vector<2x8x1xf32> to vector<2x8x8xf32>
    %55 = arith.mulf %50, %54 : vector<2x8x8xf32>
    %56 = arith.truncf %55 : vector<2x8x8xf32> to vector<2x8x8xbf16>
    "tpu.trace_start"() <{level = 10 : i32, message = "bqk,bkd->bqd"}> : () -> ()
    %cst_16 = arith.constant dense<0.000000e+00> : vector<2x8x128xf32>
    %57 = tpu.matmul %56, %34, %cst_16 {dimension_numbers = #tpu.dot_dimension_numbers<[2], [1], [1], [2], [0, 0, 0, 1, 1, 2], [0], [0]>} : vector<2x8x8xbf16>, vector<2x8x128xbf16>, vector<2x8x128xf32> -> vector<2x8x128xf32>
    "tpu.trace_stop"() : () -> ()
    %58 = vector.shape_cast %57 : vector<2x8x128xf32> to vector<16x128xf32>
    %59 = arith.truncf %58 : vector<16x128xf32> to vector<16x128xbf16>
    %c0_17 = arith.constant 0 : index
    %c0_18 = arith.constant 0 : index
    %60 = vector.load %arg4[%c0_17, %c0_18] : memref<128x128xbf16, #tpu.memory_space<vmem>>, vector<128x128xbf16>
    %cst_19 = arith.constant dense<0.000000e+00> : vector<16x128xf32>
    %61 = tpu.matmul %59, %60, %cst_19 {dimension_numbers = #tpu.dot_dimension_numbers<[1], [0], [0], [1], [0, 0, 1, 1], [], []>} : vector<16x128xbf16>, vector<128x128xbf16>, vector<16x128xf32> -> vector<16x128xf32>
    %62 = vector.broadcast %6 : vector<1x128xf32> to vector<16x128xf32>
    %63 = arith.addf %61, %62 : vector<16x128xf32>
    %64 = arith.extf %1 : vector<16x128xbf16> to vector<16x128xf32>
    %65 = arith.addf %64, %63 : vector<16x128xf32>
    %cst_20 = arith.constant dense<0.000000e+00> : vector<16xf32>
    %66 = vector.multi_reduction <add>, %65, %cst_20 [1] : vector<16x128xf32> to vector<16xf32>
    %67 = vector.shape_cast %66 : vector<16xf32> to vector<16x1xf32>
    %cst_21 = arith.constant 3.125000e-02 : f32
    %68 = vector.broadcast %cst_21 : f32 to vector<16x1xf32>
    %69 = arith.mulf %67, %68 : vector<16x1xf32>
    %70 = vector.broadcast %69 : vector<16x1xf32> to vector<16x128xf32>
    %71 = arith.subf %65, %70 : vector<16x128xf32>
    %cst_22 = arith.constant 0.000000e+00 : f32
    %72 = vector.shape_cast %15 : vector<1x128xi1> to vector<1x128xi1>
    %73 = vector.broadcast %72 : vector<1x128xi1> to vector<16x128xi1>
    %74 = vector.broadcast %cst_22 : f32 to vector<16x128xf32>
    %75 = arith.select %73, %71, %74 : vector<16x128xi1>, vector<16x128xf32>
    %76 = arith.mulf %75, %75 : vector<16x128xf32>
    %cst_23 = arith.constant dense<0.000000e+00> : vector<16xf32>
    %77 = vector.multi_reduction <add>, %76, %cst_23 [1] : vector<16x128xf32> to vector<16xf32>
    %78 = vector.shape_cast %77 : vector<16xf32> to vector<16x1xf32>
    %cst_24 = arith.constant 3.125000e-02 : f32
    %79 = vector.broadcast %cst_24 : f32 to vector<16x1xf32>
    %80 = arith.mulf %78, %79 : vector<16x1xf32>
    %cst_25 = arith.constant 9.99999974E-6 : f32
    %81 = vector.broadcast %cst_25 : f32 to vector<16x1xf32>
    %82 = arith.addf %80, %81 : vector<16x1xf32>
    %83 = math.rsqrt %82 : vector<16x1xf32>
    %84 = vector.broadcast %83 : vector<16x1xf32> to vector<16x128xf32>
    %85 = arith.mulf %75, %84 : vector<16x128xf32>
    %86 = vector.broadcast %8 : vector<1x128xf32> to vector<16x128xf32>
    %87 = arith.mulf %85, %86 : vector<16x128xf32>
    %88 = vector.broadcast %9 : vector<1x128xf32> to vector<16x128xf32>
    %89 = arith.addf %87, %88 : vector<16x128xf32>
    %90 = arith.truncf %89 : vector<16x128xf32> to vector<16x128xbf16>
    %c0_26 = arith.constant 0 : index
    %c0_27 = arith.constant 0 : index
    %91 = vector.load %arg5[%c0_26, %c0_27] : memref<128x128xbf16, #tpu.memory_space<vmem>>, vector<128x128xbf16>
    %cst_28 = arith.constant dense<0.000000e+00> : vector<16x128xf32>
    %92 = tpu.matmul %90, %91, %cst_28 {dimension_numbers = #tpu.dot_dimension_numbers<[1], [0], [0], [1], [0, 0, 1, 1], [], []>} : vector<16x128xbf16>, vector<128x128xbf16>, vector<16x128xf32> -> vector<16x128xf32>
    %93 = vector.broadcast %12 : vector<1x128xf32> to vector<16x128xf32>
    %94 = arith.addf %92, %93 : vector<16x128xf32>
    %cst_29 = arith.constant 0.000000e+00 : f32
    %95 = vector.broadcast %cst_29 : f32 to vector<16x128xf32>
    %96 = arith.maximumf %94, %95 : vector<16x128xf32>
    %97 = arith.truncf %96 : vector<16x128xf32> to vector<16x128xbf16>
    %c0_30 = arith.constant 0 : index
    %c0_31 = arith.constant 0 : index
    %98 = vector.load %arg6[%c0_30, %c0_31] : memref<128x128xbf16, #tpu.memory_space<vmem>>, vector<128x128xbf16>
    %cst_32 = arith.constant dense<0.000000e+00> : vector<16x128xf32>
    %99 = tpu.matmul %97, %98, %cst_32 {dimension_numbers = #tpu.dot_dimension_numbers<[1], [0], [0], [1], [0, 0, 1, 1], [], []>} : vector<16x128xbf16>, vector<128x128xbf16>, vector<16x128xf32> -> vector<16x128xf32>
    %100 = vector.broadcast %7 : vector<1x128xf32> to vector<16x128xf32>
    %101 = arith.addf %99, %100 : vector<16x128xf32>
    %102 = arith.addf %89, %101 : vector<16x128xf32>
    %cst_33 = arith.constant dense<0.000000e+00> : vector<16xf32>
    %103 = vector.multi_reduction <add>, %102, %cst_33 [1] : vector<16x128xf32> to vector<16xf32>
    %104 = vector.shape_cast %103 : vector<16xf32> to vector<16x1xf32>
    %cst_34 = arith.constant 3.125000e-02 : f32
    %105 = vector.broadcast %cst_34 : f32 to vector<16x1xf32>
    %106 = arith.mulf %104, %105 : vector<16x1xf32>
    %107 = vector.broadcast %106 : vector<16x1xf32> to vector<16x128xf32>
    %108 = arith.subf %102, %107 : vector<16x128xf32>
    %cst_35 = arith.constant 0.000000e+00 : f32
    %109 = vector.shape_cast %15 : vector<1x128xi1> to vector<1x128xi1>
    %110 = vector.broadcast %109 : vector<1x128xi1> to vector<16x128xi1>
    %111 = vector.broadcast %cst_35 : f32 to vector<16x128xf32>
    %112 = arith.select %110, %108, %111 : vector<16x128xi1>, vector<16x128xf32>
    %113 = arith.mulf %112, %112 : vector<16x128xf32>
    %cst_36 = arith.constant dense<0.000000e+00> : vector<16xf32>
    %114 = vector.multi_reduction <add>, %113, %cst_36 [1] : vector<16x128xf32> to vector<16xf32>
    %115 = vector.shape_cast %114 : vector<16xf32> to vector<16x1xf32>
    %cst_37 = arith.constant 3.125000e-02 : f32
    %116 = vector.broadcast %cst_37 : f32 to vector<16x1xf32>
    %117 = arith.mulf %115, %116 : vector<16x1xf32>
    %cst_38 = arith.constant 9.99999974E-6 : f32
    %118 = vector.broadcast %cst_38 : f32 to vector<16x1xf32>
    %119 = arith.addf %117, %118 : vector<16x1xf32>
    %120 = math.rsqrt %119 : vector<16x1xf32>
    %121 = vector.broadcast %120 : vector<16x1xf32> to vector<16x128xf32>
    %122 = arith.mulf %112, %121 : vector<16x128xf32>
    %123 = vector.broadcast %10 : vector<1x128xf32> to vector<16x128xf32>
    %124 = arith.mulf %122, %123 : vector<16x128xf32>
    %125 = vector.broadcast %11 : vector<1x128xf32> to vector<16x128xf32>
    %126 = arith.addf %124, %125 : vector<16x128xf32>
    %127 = vector.shape_cast %126 : vector<16x128xf32> to vector<2x8x128xf32>
    %128 = tpu.iota {dimensions = array<i32: 1>} : vector<2x8x1xi32>
    %129 = vector.shape_cast %36 : vector<2x1xi32> to vector<2x1x1xi32>
    %130 = vector.broadcast %129 : vector<2x1x1xi32> to vector<2x8x1xi32>
    %131 = arith.cmpi slt, %128, %130 : vector<2x8x1xi32>
    %cst_39 = arith.constant 0.000000e+00 : f32
    %132 = vector.shape_cast %131 : vector<2x8x1xi1> to vector<2x8x1xi1>
    %133 = vector.broadcast %132 : vector<2x8x1xi1> to vector<2x8x128xi1>
    %134 = vector.broadcast %cst_39 : f32 to vector<2x8x128xf32>
    %135 = arith.select %133, %127, %134 : vector<2x8x128xi1>, vector<2x8x128xf32>
    %136 = arith.truncf %135 : vector<2x8x128xf32> to vector<2x8x128xbf16>
    %c0_40 = arith.constant 0 : index
    %c0_41 = arith.constant 0 : index
    %c0_42 = arith.constant 0 : index
    %137 = vector.load %arg9[%c0_40, %c0_41, %c0_42] : memref<2x8x128xbf16, #tpu.memory_space<vmem>>, vector<2x8x128xbf16>
    tpu.vector_store %arg9[%c0_40, %c0_41, %c0_42], %136 {strides = array<i32>} : memref<2x8x128xbf16, #tpu.memory_space<vmem>>, vector<2x8x128xbf16>,
    return
  }
  func.func @transform_0(%arg0: i32) -> (i32, i32) {
    %c0_i32 = arith.constant 0 : i32
    %c0_i32_0 = arith.constant 0 : i32
    return %arg0, %c0_i32 : i32, i32
  }
  func.func @transform_1(%arg0: i32) -> (i32, i32, i32) {
    %c0_i32 = arith.constant 0 : i32
    %c0_i32_0 = arith.constant 0 : i32
    %c0_i32_1 = arith.constant 0 : i32
    return %arg0, %c0_i32, %c0_i32_0 : i32, i32, i32
  }
  func.func @transform_2(%arg0: i32) -> (i32, i32) {
    %c0_i32 = arith.constant 0 : i32
    %c0_i32_0 = arith.constant 0 : i32
    %c0_i32_1 = arith.constant 0 : i32
    return %c0_i32, %c0_i32_0 : i32, i32
  }
  func.func @transform_3(%arg0: i32) -> (i32, i32) {
    %c0_i32 = arith.constant 0 : i32
    %c0_i32_0 = arith.constant 0 : i32
    %c0_i32_1 = arith.constant 0 : i32
    return %c0_i32, %c0_i32_0 : i32, i32
  }
  func.func @transform_4(%arg0: i32) -> (i32, i32) {
    %c0_i32 = arith.constant 0 : i32
    %c0_i32_0 = arith.constant 0 : i32
    %c0_i32_1 = arith.constant 0 : i32
    return %c0_i32, %c0_i32_0 : i32, i32
  }
  func.func @transform_5(%arg0: i32) -> (i32, i32) {
    %c0_i32 = arith.constant 0 : i32
    %c0_i32_0 = arith.constant 0 : i32
    %c0_i32_1 = arith.constant 0 : i32
    return %c0_i32, %c0_i32_0 : i32, i32
  }
  func.func @transform_6(%arg0: i32) -> (i32, i32) {
    %c0_i32 = arith.constant 0 : i32
    %c0_i32_0 = arith.constant 0 : i32
    %c0_i32_1 = arith.constant 0 : i32
    return %c0_i32, %c0_i32_0 : i32, i32
  }
  func.func @transform_7(%arg0: i32) -> (i32, i32) {
    %c0_i32 = arith.constant 0 : i32
    %c0_i32_0 = arith.constant 0 : i32
    %c0_i32_1 = arith.constant 0 : i32
    return %c0_i32, %c0_i32_0 : i32, i32
  }
  func.func @transform_8(%arg0: i32) -> (i32, i32, i32) {
    %c0_i32 = arith.constant 0 : i32
    %c0_i32_0 = arith.constant 0 : i32
    %c0_i32_1 = arith.constant 0 : i32
    return %arg0, %c0_i32, %c0_i32_0 : i32, i32, i32
  }
}

</mosaic_0001>

<bundles_post_ra>
// kernel: tpu_custom_call.1
= control target key start
LH: loop header
LB: loop body
LE: loop exit
PB: predicated region body
PF: predicated region fallthrough
CT: control target
= control target key end

     0   :  { %13 = vsyncpa [#allocation3], 0  ;;  %s1472_s0 = inlined_call_operand.vmem [shape: s32[2,1], index: 0, kind: input, shape index: {}]   ;;  %s1473_s1 = inlined_call_operand.hbm [shape: bf16[2,8,128], index: 1, kind: input, shape index: {}]   ;;  %s1474_s2 = inlined_call_operand.hbm [shape: bf16[128,384], index: 2, kind: input, shape index: {}]   ;;  %s1475_s3 = inlined_call_operand.hbm [shape: bf16[128,128], index: 3, kind: input, shape index: {}]   ;;  %s1476_s4 = inlined_call_operand.hbm [shape: bf16[128,128], index: 4, kind: input, shape index: {}]   ;;  %s1477_s5 = inlined_call_operand.hbm [shape: bf16[128,128], index: 5, kind: input, shape index: {}]   ;;  %s1478_s6 = inlined_call_operand.hbm [shape: f32[9,128], index: 6, kind: input, shape index: {}]   ;;  %s1479_s7 = inlined_call_operand.vmem [shape: f32[1,128], index: 7, kind: input, shape index: {}]   ;;  %s1480_s8 = inlined_call_operand.hbm [shape: bf16[2,8,128], index: 8, kind: output, shape index: {}]  }
   0x1   :  { %14 = vsyncpa [#allocation6], 0 }
   0x2   :  { %15 = vsyncpa [#allocation9], 0 }
   0x3   :  { %16 = vsyncpa [#allocation12], 0  ;;  %s37_s29 = sshll.u32 %s1474_s2, 4  ;;  %s38_s29 = int_to_ptr.hbm [resolvable:$true] %s37_s29 }
   0x4   :  { %17 = vsyncpa [#allocation4], 0  ;;  %s1320_s30 = smov [#allocation5]   ;;  %s1321_s10 = smov 192  }
   0x5   :  { %s39_s9 = sshll.u32 %s1320_s30, 4  ;;  %s1322_s11 = smov 12   ;;  %s40_s9 = int_to_ptr.vmem [resolvable:$true] %s39_s9 }
   0x6   :  { %45 = dma.hbm_to_vmem [thread:$0]  %s38_s29, 3072, %s40_s9, [#allocation6], %s1321_s10, %s1321_s10, %s1322_s11  }
   0x7   :  { %s63_s14 = sshll.u32 %s1476_s4, 4  ;;  %s1323_s15 = smov [#allocation8]   ;;  %s64_s14 = int_to_ptr.hbm [resolvable:$true] %s63_s14 }
   0x8   :  { %s65_s16 = sshll.u32 %s1323_s15, 4  ;;  %s24_s19 = sshll.u32 %s1473_s1, 4  ;;  %s66_s16 = int_to_ptr.vmem [resolvable:$true] %s65_s16  ;;  %s25_s19 = int_to_ptr.hbm [resolvable:$true] %s24_s19 }
   0x9   :  { %s1324_s2 = smov 64   ;;  %s1325_s20 = smov 4  }
   0xa   :  { %71 = dma.hbm_to_vmem [thread:$0]  %s64_s14, 1024, %s66_s16, [#allocation9], %s1324_s2, %s1324_s2, %s1325_s20  }
   0xb   :  { %s50_s23 = sshll.u32 %s1475_s3, 4  ;;  %s1326_s4 = smov [#allocation2]   ;;  %s51_s23 = int_to_ptr.hbm [resolvable:$true] %s50_s23 }
   0xc   :  { %s26_s24 = sshll.u32 %s1326_s4, 4  ;;  %s1327_s1 = smov [#allocation7]   ;;  %s27_s24 = int_to_ptr.vmem [resolvable:$true] %s26_s24 }
   0xd   :  { %32 = dma.hbm_to_vmem [thread:$0]  %s25_s19, 128, %s27_s24, [#allocation3], %s1324_s2, %s1324_s2, %s1325_s20  }
   0xe   :  { %s52_s25 = sshll.u32 %s1327_s1, 4  ;;  %s76_s28 = sshll.u32 %s1477_s5, 4  ;;  %s53_s25 = int_to_ptr.vmem [resolvable:$true] %s52_s25  ;;  %s77_s28 = int_to_ptr.hbm [resolvable:$true] %s76_s28 }
   0xf   :  { %58 = dma.hbm_to_vmem [thread:$0]  %s51_s23, 1024, %s53_s25, [#allocation6], %s1324_s2, %s1324_s2, %s1325_s20  }
  0x10   :  { %s89_s30 = sshll.u32 %s1478_s6, 4  ;;  %s1328_s9 = smov [#allocation10]   ;;  %s90_s30 = int_to_ptr.hbm [resolvable:$true] %s89_s30 }
  0x11   :  { %s78_s10 = sshll.u32 %s1328_s9, 4  ;;  %s1329_s11 = smov [#allocation11]   ;;  %s79_s10 = int_to_ptr.vmem [resolvable:$true] %s78_s10 }
  0x12   :  { %84 = dma.hbm_to_vmem [thread:$0]  %s77_s28, 1024, %s79_s10, [#allocation9], %s1324_s2, %s1324_s2, %s1325_s20  }
  0x13   :  { %s91_s5 = sshll.u32 %s1329_s11, 4  ;;  %s1330_s12 = smov 128   ;;  %s92_s5 = int_to_ptr.vmem [resolvable:$true] %s91_s5 }
  0x14   :  { %s1331_s13 = smov 8  }
  0x15   :  { %97 = dma.hbm_to_vmem [thread:$0]  %s90_s30, 256, %s92_s5, [#allocation12], %s1330_s12, %s1330_s12, %s1331_s13  }
  0x16   :  { %1310 = dma.done.wait [#allocation3], 128  }
  0x17   :  { %1311 = vsyncadd [#allocation3], 4294967168 }
  0x18   :  { %1312 = dma.done.wait [#allocation6], 4096  }
  0x19   :  { %1313 = vsyncadd [#allocation6], 4294963200 }
  0x1a   :  { %1314 = dma.done.wait [#allocation9], 2048  }
  0x1b   :  { %1315 = vsyncadd [#allocation9], 4294965248 }
  0x1c   :  { %1316 = dma.done.wait [#allocation12], 256  }
  0x1d   :  { %1317 = vsyncadd [#allocation12], 4294967040  ;;  %v944_v0 = vld [vmem:[#allocation5 + $0xa8] sm:$0xf]  ;;  %v1075_v1 = vld [vmem:[#allocation5 + $0xb0] sm:$0xf0] }
  0x1e   :  { %v1074_v2 = vld [vmem:[#allocation5 + $0xac] sm:$0xf]  ;;  %v945_v3 = vor.u32 %v1075_v1, %v944_v0  ;;  %v946_v4 = vld [vmem:[#allocation5 + $0xb4] sm:$0xf0]  ;;  %v932_v5 = vld [vmem:[#allocation5 + $0x90] sm:$0xf] }
  0x1f   :  { %v1072_v6 = vld [vmem:[#allocation5 + $0x98] sm:$0xf0]  ;;  %v949_v7 = vor.u32 %v1074_v2, %v946_v4  ;;  %v1071_v8 = vld [vmem:[#allocation5 + $0x94] sm:$0xf]  ;;  %v934_v9 = vld [vmem:[#allocation5 + $0x9c] sm:$0xf0] }
  0x20   :  { %299 = vmatpush.bf16.msra.mxu0 %v945_v3  ;;  %v933_v10 = vor.u32 %v1072_v6, %v932_v5  ;;  %v937_v11 = vor.u32 %v1071_v8, %v934_v9  ;;  %v920_v12 = vld [vmem:[#allocation5 + $0x78] sm:$0xf]  ;;  %v1069_v13 = vld [vmem:[#allocation5 + $0x80] sm:$0xf0]  ;;  %v1068_v14 = vld [vmem:[#allocation5 + $0x7c] sm:$0xf]  ;;  %v130_v5 = vlaneseq }
  0x21   :  { %313 = vmatpush.bf16.msra.mxu1 %v949_v7  ;;  %v922_v15 = vld [vmem:[#allocation5 + $0x84] sm:$0xf0]  ;;  %v921_v16 = vor.u32 %v1069_v13, %v920_v12  ;;  %v908_v18 = vld [vmem:[#allocation5 + $0x60] sm:$0xf]  ;;  %v1066_v19 = vld [vmem:[#allocation5 + $0x68] sm:$0xf0] }
  0x22   :  { %v925_v17 = vor.u32 %v1068_v14, %v922_v15  ;;  %v1065_v20 = vld [vmem:[#allocation5 + $0x64] sm:$0xf]  ;;  %v910_v21 = vld [vmem:[#allocation5 + $0x6c] sm:$0xf0]  ;;  %v909_v22 = vor.u32 %v1066_v19, %v908_v18  ;;  %v896_v24 = vld [vmem:[#allocation5 + $0x48] sm:$0xf] }
  0x23   :  { %v913_v23 = vor.u32 %v1065_v20, %v910_v21  ;;  %v1063_v25 = vld [vmem:[#allocation5 + $0x50] sm:$0xf0]  ;;  %v1062_v26 = vld [vmem:[#allocation5 + $0x4c] sm:$0xf]  ;;  %v898_v27 = vld [vmem:[#allocation5 + $0x54] sm:$0xf0] }
  0x24   :  { %300 = vmatpush.bf16.msra.mxu0 %v933_v10  ;;  %v897_v28 = vor.u32 %v1063_v25, %v896_v24  ;;  %v901_v29 = vor.u32 %v1062_v26, %v898_v27  ;;  %v884_v30 = vld [vmem:[#allocation5 + $0x30] sm:$0xf]  ;;  %v1060_v31 = vld [vmem:[#allocation5 + $0x38] sm:$0xf0]  ;;  %v1059_v32 = vld [vmem:[#allocation5 + $0x34] sm:$0xf] }
  0x25   :  { %314 = vmatpush.bf16.msra.mxu1 %v937_v11  ;;  %v886_v33 = vld [vmem:[#allocation5 + $0x3c] sm:$0xf0]  ;;  %v885_v34 = vor.u32 %v1060_v31, %v884_v30  ;;  %v872_v36 = vld [vmem:[#allocation5 + $0x18] sm:$0xf]  ;;  %v1057_v37 = vld [vmem:[#allocation5 + $0x20] sm:$0xf0] }
  0x26   :  { %v889_v35 = vor.u32 %v1059_v32, %v886_v33  ;;  %v1056_v38 = vld [vmem:[#allocation5 + $0x1c] sm:$0xf]  ;;  %v874_v39 = vld [vmem:[#allocation5 + $0x24] sm:$0xf0]  ;;  %v873_v40 = vor.u32 %v1057_v37, %v872_v36  ;;  %v860_v42 = vld [vmem:[#allocation5] sm:$0xf] }
  0x27   :  { %v877_v41 = vor.u32 %v1056_v38, %v874_v39  ;;  %v1054_v43 = vld [vmem:[#allocation5 + $0x8] sm:$0xf0]  ;;  %v1053_v44 = vld [vmem:[#allocation5 + $0x4] sm:$0xf]  ;;  %v862_v45 = vld [vmem:[#allocation5 + $0xc] sm:$0xf0] }
  0x28   :  { %301 = vmatpush.bf16.msra.mxu0 %v921_v16  ;;  %v861_v46 = vor.u32 %v1054_v43, %v860_v42  ;;  %v865_v47 = vor.u32 %v1053_v44, %v862_v45  ;;  %v1410_v48 = vld [vmem:[#allocation2] sm:$0xff]  ;;  %v1332_v50 = vmov 0   ;;  %v1426_v52 = vld [vmem:[#allocation11] sm:$0xff]  ;;  %v952_v7 = vld [vmem:[#allocation5 + $0xb0] sm:$0xf]  ;;  %v1431_v11 = vand.u32 127, %v130_v5 }
  0x29   :  { %315 = vmatpush.bf16.msra.mxu1 %v925_v17  ;;  %v1417_v49 = vld [vmem:[%s1472_s0] sm:$0x3]  ;;  %1121 = vset.pattern.permute.xlu0 %v1332_v50  ;;  %v341_v53 = vperm.slane %v1426_v52, 0  ;;  %v348_v54 = vperm.slane %v1426_v52, 1  ;;  %v1076_v8 = vld [vmem:[#allocation5 + $0xb8] sm:$0xf0] }
  0x2a   :  { %1123 = vset.pattern.permute.xlu1 %v1332_v50  ;;  %361 = vperm.xlu0 %1121, %v1417_v49   ;;  %v359_v51 = vrot.slane %v1417_v49, 1  ;;  %v940_v9 = vld [vmem:[#allocation5 + $0x98] sm:$0xf]  ;;  %v953_v12 = vor.u32 %v1076_v8, %v952_v7  ;;  %v1073_v13 = vld [vmem:[#allocation5 + $0xa0] sm:$0xf0]  ;;  %vm398_vm1 = vcmask 64512  }
  0x2b   :  { %1122 = vset.pattern.permute.xlu2 %v1332_v50  ;;  %v941_v14 = vor.u32 %v1073_v13, %v940_v9  ;;  %v928_v15 = vld [vmem:[#allocation5 + $0x80] sm:$0xf]  ;;  %v1070_v16 = vld [vmem:[#allocation5 + $0x88] sm:$0xf0]  ;;  %v1333_v18 = vmov -1e+30  }
  0x2c   :  { %302 = vmatpush.bf16.msra.mxu0 %v909_v22  ;;  %327 = vmatpush.bf16.msra.mxu2 %v953_v12  ;;  %v929_v17 = vor.u32 %v1070_v16, %v928_v15  ;;  %v916_v20 = vld [vmem:[#allocation5 + $0x68] sm:$0xf]  ;;  %v1067_v21 = vld [vmem:[#allocation5 + $0x70] sm:$0xf0]  ;;  %v904_v25 = vld [vmem:[#allocation5 + $0x50] sm:$0xf] }
  0x2d   :  { %316 = vmatpush.bf16.msra.mxu1 %v913_v23  ;;  %v917_v24 = vor.u32 %v1067_v21, %v916_v20  ;;  %v1064_v26 = vld [vmem:[#allocation5 + $0x58] sm:$0xf0]  ;;  %v892_v30 = vld [vmem:[#allocation5 + $0x38] sm:$0xf]  ;;  %v1061_v31 = vld [vmem:[#allocation5 + $0x40] sm:$0xf0] }
  0x2e   :  { %v1058_v36 = vld [vmem:[#allocation5 + $0x28] sm:$0xf0]  ;;  %vm426_vm3 = vcmask 1043456   ;;  %v1083_v7 = vld [vmem:[#allocation7 + $0x30] sm:$0xff]  ;;  %vm132_vm4 = vcmp.lt.s32.totalorder %v1431_v11, 32  ;;  %s838_s19 = sshll.u32 %s1480_s8, 4  ;;  %s839_s19 = int_to_ptr.hbm [resolvable:$true] %s838_s19 }
  0x2f   :  { %v1082_v9 = vld [vmem:[#allocation7 + $0x28] sm:$0xff]  ;;  %v1079_v20 = vld [vmem:[#allocation7 + $0x10] sm:$0xff] }
  0x30   :  { %303 = vmatpush.bf16.msra.mxu0 %v897_v28  ;;  %328 = vmatpush.bf16.msra.mxu2 %v941_v14  ;;  %v1080_v14 = vld [vmem:[#allocation7 + $0x18] sm:$0xff]  ;;  %v1078_v21 = vld [vmem:[#allocation7 + $0x8] sm:$0xff] }
  0x31   :  { %317 = vmatpush.bf16.msra.mxu1 %v901_v29  ;;  %v905_v29 = vor.u32 %v1064_v26, %v904_v25 }
  0x32   :  { %365 = vperm.xlu0 %1121, %v359_v51  }
  0x34   :  { %304 = vmatpush.bf16.msra.mxu0 %v885_v34  ;;  %329 = vmatpush.bf16.msra.mxu2 %v929_v17  ;;  %v893_v34 = vor.u32 %v1061_v31, %v892_v30 }
  0x35   :  { %318 = vmatpush.bf16.msra.mxu1 %v889_v35  ;;  %v880_v35 = vld [vmem:[#allocation5 + $0x20] sm:$0xf] }
  0x36   :  { %v881_v37 = vor.u32 %v1058_v36, %v880_v35 }
  0x38   :  { %305 = vmatpush.bf16.msra.mxu0 %v873_v40  ;;  %330 = vmatpush.bf16.msra.mxu2 %v917_v24  ;;  %v868_v40 = vld [vmem:[#allocation5 + $0x8] sm:$0xf] }
  0x39   :  { %319 = vmatpush.bf16.msra.mxu1 %v877_v41  ;;  %v1055_v41 = vld [vmem:[#allocation5 + $0x10] sm:$0xf0] }
  0x3a   :  { %v869_v44 = vor.u32 %v1055_v41, %v868_v40 }
  0x3c   :  { %306 = vmatpush.bf16.msra.mxu0 %v861_v46  ;;  %331 = vmatpush.bf16.msra.mxu2 %v905_v29  ;;  %v479_v29 = vperm.slane %v1426_v52, 3 }
  0x3d   :  { %320 = vmatpush.bf16.msra.mxu1 %v865_v47 }
  0x3f   :  { %307 = vmatmul.bf16.vlgmr.msra.gmra.mxu0 %v1410_v48 }
  0x40   :  { %321 = vmatmul.bf16.vlgmr.msra.gmra.mxu1 %v1410_v48  ;;  %332 = vmatpush.bf16.msra.mxu2 %v893_v34 }
  0x44   :  { %333 = vmatpush.bf16.msra.mxu2 %v881_v37 }
  0x48   :  { %334 = vmatpush.bf16.msra.mxu2 %v869_v44 }
  0x4b   :  { %335 = vmatmul.bf16.vlgmr.msra.gmra.mxu2 %v1410_v48 }
  0x9c   :  { %v362_v6 = vpop.permute.xlu0 %361 }
  0x9d   :  { %v363_v10 = vperm.slane %v362_v6, 0  ;;  %v1084_v6 = vld [vmem:[#allocation7 + $0x38] sm:$0xff] }
  0x9e   :  { %528 = vmatpush.bf16.msrb.mxu1 %v1084_v6 }
  0x9f   :  { %vm368_vm0 = vcmp.lt.s32.totalorder %v1431_v11, %v363_v10  ;;  %v1081_v10 = vld [vmem:[#allocation7 + $0x20] sm:$0xff] }
  0xa0   :  { %v370_v19 = vsel %vm368_vm0, 0.0, %v1333_v18 }
  0xa2   :  { %529 = vmatpush.bf16.msrb.mxu1 %v1083_v7  ;;  %v1098_v7 = vld [vmem:[#allocation10 + $0x28] sm:$0xff] }
  0xa4   :  { %v366_v28 = vpop.permute.xlu0 %365 }
  0xa5   :  { %v367_v32 = vperm.slane %v366_v28, 0  ;;  %v125_v28 = vld [vmem:[#allocation2] sm:$0xff]  }
  0xa6   :  { %530 = vmatpush.bf16.msrb.mxu1 %v1082_v9  ;;  %v542_v30 = vunpack.c.l.bf16 %v125_v28  ;;  %v543_v34 = vunpack.c.h.bf16 %v125_v28 }
  0xa7   :  { %vm369_vm2 = vcmp.lt.s32.totalorder %v1431_v11, %v367_v32 }
  0xa8   :  { %v371_v38 = vsel %vm369_vm2, 0.0, %v1333_v18 }
  0xaa   :  { %531 = vmatpush.bf16.msrb.mxu1 %v1081_v10  ;;  %v1097_v10 = vld [vmem:[#allocation10 + $0x20] sm:$0xff] }
  0xae   :  { %532 = vmatpush.bf16.msrb.mxu1 %v1080_v14 }
  0xb2   :  { %533 = vmatpush.bf16.msrb.mxu1 %v1079_v20 }
  0xb6   :  { %534 = vmatpush.bf16.msrb.mxu1 %v1078_v21  ;;  %v590_v21 = vperm.slane %v1426_v52, 5 }
  0xbc   :  { %v308_v55 = vpop.f32.mrf.mxu0 }
  0xbd   :  { %v342_v56 = vadd.f32 %v341_v53, %v308_v55  ;;  %v322_v57 = vpop.f32.mrf.mxu1 }
  0xbe   :  { %v349_v58 = vadd.f32 %v348_v54, %v322_v57 }
  0xbf   :  { %v344_v60 = vmul.f32 0.17677669, %v342_v56 }
  0xc0   :  { %v351_v59 = vpack.c.bf16 %v349_v58, %v349_v58 }
  0xc1   :  { %v346_v62 = vpack.c.bf16 %v344_v60, %v344_v60 }
  0xc2   :  { %379 = vmatpush.bf16.xpose.msrb.mxu0 %v351_v59 }
  0xc4   :  { %v310_v61 = vpop.f32.mrf.mxu0 }
  0xc5   :  { %v324_v63 = vpop.f32.mrf.mxu1  ;;  %v343_v1 = vadd.f32 %v341_v53, %v310_v61 }
  0xc6   :  { %v350_v0 = vadd.f32 %v348_v54, %v324_v63 }
  0xc7   :  { %v345_v3 = vmul.f32 0.17677669, %v343_v1 }
  0xc8   :  { %v352_v2 = vpack.c.bf16 %v350_v0, %v350_v0 }
  0xc9   :  { %380 = vmatmul.bf16.vlgmr.msrb.gmra.mxu0 %v346_v62  ;;  %v347_v4 = vpack.c.bf16 %v345_v3, %v345_v3  ;;  %v353_v62 = vperm.slane %v1426_v52, 2 }
  0xca   :  { %392 = vmatpush.bf16.xpose.msra.mxu3 %v352_v2 }
  0xce   :  { %v336_v61 = vpop.f32.mrf.mxu2 }
  0xcf   :  { %v354_v63 = vadd.f32 %v353_v62, %v336_v61  ;;  %v1085_v61 = vld [vmem:[#allocation8] sm:$0xff] }
  0xd1   :  { %393 = vmatmul.bf16.vlgmr.msra.gmra.mxu3 %v347_v4  ;;  %v356_v1 = vpack.c.bf16 %v354_v63, %v354_v63  ;;  %v1100_v63 = vld [vmem:[#allocation10 + $0x38] sm:$0xff] }
  0xd3   :  { %v428_v3 = vsel %vm426_vm3, %v356_v1, 0 }
  0xd4   :  { %437 = vmatpush.bf16.msrb.mxu3 %v428_v3 }
  0xd6   :  { %v338_v48 = vpop.f32.mrf.mxu2 }
  0xd7   :  { %v355_v0 = vadd.f32 %v353_v62, %v338_v48 }
  0xd8   :  { %746 = vmatpush.bf16.msra.mxu3 %v1100_v63 }
  0xd9   :  { %v357_v2 = vpack.c.bf16 %v355_v0, %v355_v0 }
  0xdb   :  { %v447_v4 = vsel %vm426_vm3, %v357_v2, 0  ;;  %v1099_v2 = vld [vmem:[#allocation10 + $0x30] sm:$0xff] }
  0xdc   :  { %456 = vmatpush.bf16.msra.mxu0 %v447_v4  ;;  %747 = vmatpush.bf16.msra.mxu3 %v1099_v2 }
  0xe0   :  { %748 = vmatpush.bf16.msra.mxu3 %v1098_v7 }
  0xe4   :  { %749 = vmatpush.bf16.msra.mxu3 %v1097_v10 }
 0x146   :  { %v381_v22 = vpop.f32.mrf.mxu0 }
 0x147   :  { %v382_v23 = vadd.f32 %v381_v22, %v370_v19  ;;  %v1077_v22 = vld [vmem:[#allocation7] sm:$0xff] }
 0x148   :  { %535 = vmatpush.bf16.msrb.mxu1 %v1077_v22 }
 0x149   :  { %v399_v27 = vsel %vm398_vm1, %v382_v23, -inf }
 0x14a   :  { %400 = vmax.xlane.f32.xlu1 %v399_v27 }
 0x14e   :  { %v383_v33 = vpop.f32.mrf.mxu0 }
 0x154   :  { %v394_v39 = vpop.f32.mrf.mxu3 }
 0x155   :  { %v395_v42 = vadd.f32 %v394_v39, %v371_v38 }
 0x157   :  { %v402_v43 = vsel %vm398_vm1, %v395_v42, -inf }
 0x158   :  { %403 = vmax.xlane.f32.xlu1 %v402_v43 }
 0x15c   :  { %v396_v45 = vpop.f32.mrf.mxu3 }
 0x1bd   :  { %v401_v46 = vpop.xlane.xlu1 %400 }
 0x1be   :  { %v405_v47 = vsub.f32 %v382_v23, %v401_v46 }
 0x1c0   :  { %v407_v53 = vmul.f32 1.442695, %v405_v47 }
 0x1c2   :  { %1126 = vpow2.f32 %v407_v53  ;;  %v1092_v53 = vld [vmem:[#allocation8 + $0x38] sm:$0xff] }
 0x1c3   :  { %664 = vmatpush.bf16.msrb.mxu2 %v1092_v53 }
 0x1c8   :  { %v1127_v54 = vpop.eup %1126 }
 0x1c9   :  { %v411_v55 = vsel %vm398_vm1, %v1127_v54, 0.0 }
 0x1ca   :  { %412 = vadd.xlane.f32.xlu2 %v411_v55  ;;  %v1090_v55 = vld [vmem:[#allocation8 + $0x28] sm:$0xff] }
 0x1cb   :  { %v404_v56 = vpop.xlane.xlu1 %403 }
 0x1cc   :  { %v406_v57 = vsub.f32 %v395_v42, %v404_v56  ;;  %v1089_v56 = vld [vmem:[#allocation8 + $0x20] sm:$0xff] }
 0x1ce   :  { %v409_v58 = vmul.f32 1.442695, %v406_v57  ;;  %v1088_v57 = vld [vmem:[#allocation8 + $0x18] sm:$0xff] }
 0x1d0   :  { %1128 = vpow2.f32 %v409_v58  ;;  %v1087_v58 = vld [vmem:[#allocation8 + $0x10] sm:$0xff] }
 0x1d6   :  { %v1129_v59 = vpop.eup %1128 }
 0x1d7   :  { %v414_v60 = vsel %vm398_vm1, %v1129_v59, 0.0 }
 0x1d8   :  { %415 = vadd.xlane.f32.xlu2 %v414_v60 }
 0x23d   :  { %v413_v8 = vpop.xlane.xlu2 %412 }
 0x23e   :  { %1130 = vrcp.f32 %v413_v8 }
 0x244   :  { %v1131_v12 = vpop.eup %1130 }
 0x245   :  { %v419_v13 = vmul.f32 %v1131_v12, %v1127_v54  ;;  %v1091_v54 = vld [vmem:[#allocation8 + $0x30] sm:$0xff] }
 0x246   :  { %665 = vmatpush.bf16.msrb.mxu2 %v1091_v54 }
 0x247   :  { %v421_v15 = vpack.c.bf16 %v419_v13, %v419_v13 }
 0x249   :  { %954 = vmatmul.msk.bf16.vlgmr.msrb.gmra.mxu3 %vm398_vm1, %v421_v15 }
 0x24a   :  { %666 = vmatpush.bf16.msrb.mxu2 %v1090_v55 }
 0x24b   :  { %v416_v16 = vpop.xlane.xlu2 %415 }
 0x24c   :  { %1132 = vrcp.f32 %v416_v16 }
 0x24e   :  { %667 = vmatpush.bf16.msrb.mxu2 %v1089_v56 }
 0x252   :  { %v1133_v17 = vpop.eup %1132  ;;  %668 = vmatpush.bf16.msrb.mxu2 %v1088_v57 }
 0x253   :  { %v420_v18 = vmul.f32 %v1133_v17, %v1129_v59  ;;  %v1086_v59 = vld [vmem:[#allocation8 + $0x8] sm:$0xff] }
 0x255   :  { %v422_v19 = vpack.c.bf16 %v420_v18, %v420_v18 }
 0x256   :  { %669 = vmatpush.bf16.msrb.mxu2 %v1087_v58 }
 0x257   :  { %955 = vmatmul.msk.bf16.vlgmr.msra.gmra.mxu0 %vm398_vm1, %v422_v19 }
 0x25a   :  { %670 = vmatpush.bf16.msrb.mxu2 %v1086_v59 }
 0x25e   :  { %671 = vmatpush.bf16.msrb.mxu2 %v1085_v61 }
 0x2cc   :  { %v439_v23 = vpop.f32.mrf.mxu3 }
 0x2d4   :  { %v441_v24 = vpop.f32.mrf.mxu3  ;;  %v458_v25 = vpop.f32.mrf.mxu0 }
 0x2d5   :  { %v462_v26 = vpack.c.bf16 %v458_v25, %v439_v23 }
 0x2d7   :  { %536 = vmatmul.bf16.vlgmr.msrb.gmra.mxu1 %v462_v26  ;;  %v593_v26 = vperm.slane %v1426_v52, 6 }
 0x2dc   :  { %v460_v27 = vpop.f32.mrf.mxu0 }
 0x354   :  { %v537_v31 = vpop.f32.mrf.mxu1 }
 0x355   :  { %v538_v32 = vadd.f32 %v537_v31, %v479_v29  ;;  %v1096_v31 = vld [vmem:[#allocation10 + $0x18] sm:$0xff] }
 0x356   :  { %750 = vmatpush.bf16.msra.mxu3 %v1096_v31 }
 0x357   :  { %v544_v33 = vadd.f32 %v542_v30, %v538_v32  ;;  %v1095_v32 = vld [vmem:[#allocation10 + $0x10] sm:$0xff] }
 0x359   :  { %546 = vadd.xlane.f32.xlu0 %v544_v33 }
 0x35a   :  { %751 = vmatpush.bf16.msra.mxu3 %v1095_v32 }
 0x35c   :  { %v539_v35 = vpop.f32.mrf.mxu1 }
 0x35d   :  { %v540_v36 = vadd.f32 %v539_v35, %v479_v29 }
 0x35f   :  { %v545_v37 = vadd.f32 %v543_v34, %v540_v36  ;;  %v1093_v34 = vld [vmem:[#allocation10] sm:$0xff]  ;;  %v1124_v36 = vld [vmem:[%s1479_s7] ss:$0 sm:$0xff]  ;;  %s1334_s7 = smov [#allocation13]  }
 0x360   :  { %s836_s16 = sshll.u32 %s1334_s7, 4  ;;  %s837_s16 = int_to_ptr.vmem [resolvable:$true] %s836_s16 }
 0x361   :  { %548 = vadd.xlane.f32.xlu1 %v545_v37 }
 0x3cc   :  { %v547_v38 = vpop.xlane.xlu0 %546 }
 0x3cd   :  { %v550_v39 = vmul.f32 0.03125, %v547_v38 }
 0x3cf   :  { %v552_v40 = vsub.f32 %v544_v33, %v550_v39  ;;  %v1094_v33 = vld [vmem:[#allocation10 + $0x8] sm:$0xff] }
 0x3d0   :  { %752 = vmatpush.bf16.msra.mxu3 %v1094_v33 }
 0x3d1   :  { %v556_v41 = vsel %vm132_vm4, %v552_v40, 0.0 }
 0x3d2   :  { %v558_v42 = vmul.f32 %v556_v41, %v556_v41 }
 0x3d4   :  { %v549_v43 = vpop.xlane.xlu1 %548  ;;  %560 = vadd.xlane.f32.xlu2 %v558_v42  ;;  %753 = vmatpush.bf16.msra.mxu3 %v1093_v34 }
 0x3d5   :  { %v551_v44 = vmul.f32 0.03125, %v549_v43  ;;  %v697_v43 = vperm.slane %v1426_v52, 4 }
 0x3d7   :  { %v553_v45 = vsub.f32 %v545_v37, %v551_v44 }
 0x3d9   :  { %v557_v46 = vsel %vm132_vm4, %v553_v45, 0.0 }
 0x3da   :  { %v559_v47 = vmul.f32 %v557_v46, %v557_v46 }
 0x3dc   :  { %562 = vadd.xlane.f32.xlu1 %v559_v47 }
 0x447   :  { %v561_v60 = vpop.xlane.xlu2 %560 }
 0x448   :  { %v564_v62 = vmul.f32 0.03125, %v561_v60 }
 0x44a   :  { %v566_v48 = vadd.f32 1e-05, %v564_v62 }
 0x44c   :  { %1134 = vrsqrt.f32 %v566_v48  ;;  %vm574_vm6 = vweird.f32 %v566_v48 }
 0x44f   :  { %v563_v0 = vpop.xlane.xlu1 %562 }
 0x450   :  { %v565_v1 = vmul.f32 0.03125, %v563_v0  ;;  %v812_v0 = vperm.slane %v1417_v49, 0 }
 0x452   :  { %v1135_v3 = vpop.eup %1134  ;;  %v567_v4 = vadd.f32 1e-05, %v565_v1  ;;  %v811_v1 = vshrl.u32 %v130_v5, 7 }
 0x453   :  { %v569_v6 = vmul.f32 %v1135_v3, %v566_v48  ;;  %vm575_vm5 = vweird.f32 %v1135_v3 }
 0x454   :  { %1136 = vrsqrt.f32 %v567_v4  ;;  %vm576_vm7 = vmor %vm574_vm6, %vm575_vm5  ;;  %vm584_vm9 = vweird.f32 %v567_v4  ;;  %vm814_vm11 = vcmp.lt.s32.totalorder %v811_v1, %v812_v0 }
 0x455   :  { %v570_v8 = vmul.f32 %v1135_v3, %v569_v6  ;;  %v816_v2 = vsel %vm814_vm11, 1, %v1332_v50 }
 0x457   :  { %v571_v9 = vmul.f32 0.5, %v570_v8 }
 0x459   :  { %v572_v12 = vsub.f32 1.5, %v571_v9 }
 0x45a   :  { %v1137_v13 = vpop.eup %1136 }
 0x45b   :  { %v573_v14 = vmul.f32 %v1135_v3, %v572_v12  ;;  %v579_v15 = vmul.f32 %v1137_v13, %v567_v4  ;;  %vm585_vm8 = vweird.f32 %v1137_v13 }
 0x45c   :  { %vm586_vm10 = vmor %vm584_vm9, %vm585_vm8 }
 0x45d   :  { %v580_v16 = vmul.f32 %v1137_v13, %v579_v15  ;;  %v577_v17 = vsel %vm576_vm7, %v1135_v3, %v573_v14  ;;  %v813_v3 = vperm.slane %v359_v51, 0 }
 0x45e   :  { %v588_v20 = vmul.f32 %v577_v17, %v556_v41 }
 0x45f   :  { %v581_v18 = vmul.f32 0.5, %v580_v16  ;;  %vm815_vm12 = vcmp.lt.s32.totalorder %v811_v1, %v813_v3 }
 0x460   :  { %v591_v25 = vmul.f32 %v590_v21, %v588_v20  ;;  %v817_v4 = vsel %vm815_vm12, 1, %v1332_v50  ;;  %v804_v20 = vperm.slane %v1426_v52, 7 }
 0x461   :  { %v582_v19 = vsub.f32 1.5, %v581_v18 }
 0x462   :  { %v594_v28 = vadd.f32 %v593_v26, %v591_v25 }
 0x463   :  { %v583_v22 = vmul.f32 %v1137_v13, %v582_v19 }
 0x465   :  { %v587_v23 = vsel %vm586_vm10, %v1137_v13, %v583_v22 }
 0x466   :  { %v589_v24 = vmul.f32 %v587_v23, %v557_v46 }
 0x468   :  { %v592_v27 = vmul.f32 %v590_v21, %v589_v24  ;;  %v1125_v24 = vld [vmem:[#allocation11 + $0x8] ss:$0 sm:$0xff] }
 0x46a   :  { %v595_v29 = vadd.f32 %v593_v26, %v592_v27 }
 0x46c   :  { %v596_v30 = vpack.c.bf16 %v595_v29, %v594_v28 }
 0x46e   :  { %672 = vmatmul.bf16.vlgmr.msrb.gmra.mxu2 %v596_v30 }
 0x4f1   :  { %v673_v35 = vpop.f32.mrf.mxu2 }
 0x4f2   :  { %v674_v37 = vadd.f32 %v1124_v36, %v673_v35 }
 0x4f4   :  { %v678_v40 = vmax.f32 %v674_v37, 0.0 }
 0x4f9   :  { %v675_v38 = vpop.f32.mrf.mxu2 }
 0x4fa   :  { %v676_v39 = vadd.f32 %v1124_v36, %v675_v38 }
 0x4fc   :  { %v679_v41 = vmax.f32 %v676_v39, 0.0 }
 0x4fe   :  { %v680_v42 = vpack.c.bf16 %v679_v41, %v678_v40 }
 0x500   :  { %754 = vmatmul.bf16.vlgmr.msra.gmra.mxu3 %v680_v42 }
 0x583   :  { %v755_v44 = vpop.f32.mrf.mxu3 }
 0x584   :  { %v756_v45 = vadd.f32 %v755_v44, %v697_v43 }
 0x586   :  { %v760_v46 = vadd.f32 %v756_v45, %v594_v28 }
 0x588   :  { %762 = vadd.xlane.f32.xlu2 %v760_v46 }
 0x58b   :  { %v757_v47 = vpop.f32.mrf.mxu3 }
 0x58c   :  { %v758_v53 = vadd.f32 %v757_v47, %v697_v43 }
 0x58e   :  { %v761_v54 = vadd.f32 %v758_v53, %v595_v29 }
 0x590   :  { %764 = vadd.xlane.f32.xlu1 %v761_v54 }
 0x5fb   :  { %v763_v55 = vpop.xlane.xlu2 %762 }
 0x5fc   :  { %v766_v56 = vmul.f32 0.03125, %v763_v55 }
 0x5fe   :  { %v768_v57 = vsub.f32 %v760_v46, %v766_v56 }
 0x600   :  { %v770_v58 = vsel %vm132_vm4, %v768_v57, 0.0 }
 0x601   :  { %v772_v59 = vmul.f32 %v770_v58, %v770_v58 }
 0x603   :  { %v765_v60 = vpop.xlane.xlu1 %764  ;;  %774 = vadd.xlane.f32.xlu2 %v772_v59 }
 0x604   :  { %v767_v61 = vmul.f32 0.03125, %v765_v60 }
 0x606   :  { %v769_v62 = vsub.f32 %v761_v54, %v767_v61 }
 0x608   :  { %v771_v48 = vsel %vm132_vm4, %v769_v62, 0.0 }
 0x609   :  { %v773_v63 = vmul.f32 %v771_v48, %v771_v48 }
 0x60b   :  { %776 = vadd.xlane.f32.xlu1 %v773_v63 }
 0x61b   :  { %819 = vperm.xlu2 %1122, %v816_v2  }
 0x624   :  { %822 = vperm.xlu1 %1123, %v817_v4  }
 0x676   :  { %v775_v6 = vpop.xlane.xlu2 %774 }
 0x677   :  { %v778_v11 = vmul.f32 0.03125, %v775_v6 }
 0x679   :  { %v780_v7 = vadd.f32 1e-05, %v778_v11 }
 0x67b   :  { %1138 = vrsqrt.f32 %v780_v7  ;;  %vm788_vm14 = vweird.f32 %v780_v7 }
 0x67e   :  { %v777_v8 = vpop.xlane.xlu1 %776  ;;  %v820_v26 = vpop.permute.xlu2 %819 }
 0x67f   :  { %v779_v9 = vmul.f32 0.03125, %v777_v8  ;;  %vm824_vm3 = vcmp.eq.s32.totalorder %v820_v26, 1 }
 0x681   :  { %v1139_v10 = vpop.eup %1138  ;;  %v781_v12 = vadd.f32 1e-05, %v779_v9 }
 0x682   :  { %v783_v5 = vmul.f32 %v1139_v10, %v780_v7  ;;  %vm789_vm13 = vweird.f32 %v1139_v10 }
 0x683   :  { %1140 = vrsqrt.f32 %v781_v12  ;;  %vm790_vm15 = vmor %vm788_vm14, %vm789_vm13  ;;  %vm798_vm1 = vweird.f32 %v781_v12 }
 0x684   :  { %v784_v13 = vmul.f32 %v1139_v10, %v783_v5 }
 0x686   :  { %v785_v14 = vmul.f32 0.5, %v784_v13 }
 0x688   :  { %v786_v15 = vsub.f32 1.5, %v785_v14 }
 0x689   :  { %v1141_v49 = vpop.eup %1140 }
 0x68a   :  { %v787_v51 = vmul.f32 %v1139_v10, %v786_v15  ;;  %v793_v16 = vmul.f32 %v1141_v49, %v781_v12  ;;  %vm799_vm0 = vweird.f32 %v1141_v49 }
 0x68b   :  { %vm800_vm2 = vmor %vm798_vm1, %vm799_vm0 }
 0x68c   :  { %v794_v50 = vmul.f32 %v1141_v49, %v793_v16  ;;  %v791_v17 = vsel %vm790_vm15, %v1139_v10, %v787_v51 }
 0x68d   :  { %v802_v19 = vmul.f32 %v791_v17, %v770_v58 }
 0x68e   :  { %v795_v18 = vmul.f32 0.5, %v794_v50 }
 0x68f   :  { %v805_v23 = vmul.f32 %v804_v20, %v802_v19 }
 0x690   :  { %v796_v21 = vsub.f32 1.5, %v795_v18 }
 0x691   :  { %v808_v29 = vadd.f32 %v1125_v24, %v805_v23 }
 0x692   :  { %v797_v22 = vmul.f32 %v1141_v49, %v796_v21 }
 0x693   :  { %v826_v52 = vsel %vm824_vm3, %v808_v29, 0.0 }
 0x694   :  { %v801_v25 = vsel %vm800_vm2, %v1141_v49, %v797_v22 }
 0x695   :  { %v803_v27 = vmul.f32 %v801_v25, %v771_v48 }
 0x696   :  { %v823_v28 = vpop.permute.xlu1 %822 }
 0x697   :  { %v806_v30 = vmul.f32 %v804_v20, %v803_v27  ;;  %vm825_vm4 = vcmp.eq.s32.totalorder %v823_v28, 1 }
 0x699   :  { %v809_v31 = vadd.f32 %v1125_v24, %v806_v30 }
 0x69b   :  { %v827_v32 = vsel %vm825_vm4, %v809_v31, 0.0 }
 0x69c   :  { %v1104_v33 = vpack.c.bf16 %v827_v32, %v826_v52 }
 0x69e   :  { %1105 = vst [vmem:[#allocation13] sm:$0xff] %v1104_v33  }
 0x69f   :  { %844 = dma.vmem_to_hbm [thread:$0]  %s837_s16, 128, %s839_s19, [#allocation4], %s1324_s2, %s1324_s2, %s1325_s20  }
 0x6a0   :  { %1318 = dma.done.wait [#allocation4], 128  }
 0x6a1   :  { %1319 = vsyncadd [#allocation4], 4294967168 }
 0x6a2   :  { %849 = vsyncpa [#allocation3], 1 }
 0x6a3   :  { %850 = vsyncpa [#allocation6], 1 }
 0x6a4   :  { %851 = vsyncpa [#allocation9], 1 }
 0x6a5   :  { %852 = vsyncpa [#allocation12], 1 }
 0x6a6   :  { %853 = vsyncpa [#allocation4], 1 }

</bundles_post_ra>
